<compile_context>
chip_gen: v7x
topology: tpu7x:2x2x1
jax: 0.10.0
libtpu: 0.0.40
codegen_flags: <defaults>
</compile_context>

<pallas_src>
import jax
import jax.numpy as jnp
from jax.experimental import pallas as pl
from jax.experimental.pallas import tpu as pltpu


def _round_up(x: int, m: int) -> int:
    return (x + m - 1) // m * m


# ----------------------------- Pallas kernels ------------------------------ #

def _linear_kernel(x_ref, w_ref, o_ref):
    """x_ref: (1, tm, K), w_ref: (K, n_pad) resident, o_ref: (1, tm, n_pad)."""
    o_ref[0] = jnp.dot(x_ref[0], w_ref[...],
                       preferred_element_type=jnp.float32).astype(o_ref.dtype)


def _linear_bias_kernel(x_ref, w_ref, b_ref, o_ref):
    """Same as _linear_kernel plus an f32 bias add in the epilogue."""
    acc = jnp.dot(x_ref[0], w_ref[...], preferred_element_type=jnp.float32)
    o_ref[0] = (acc + b_ref[...].astype(jnp.float32)).astype(o_ref.dtype)


def _pick_tm(n_rows: int, batch: int, k_pad: int, n_pad: int, itemsize: int,
             tm_target: int = 1024) -> int:
    """Row-tile size: as large as possible under a v5e-safe VMEM budget."""
    budget = 12 * 1024 * 1024                       # leave headroom under 16 MiB (v5e)
    fixed = 2 * k_pad * n_pad * itemsize + 2 * n_pad * 4   # resident W (+bias), 2 bufs
    per_row = 2 * k_pad * itemsize + 2 * n_pad * itemsize  # double-buffered in + out
    tm_cap = max(16, (budget - fixed) // per_row)
    tm = min(tm_target, tm_cap)
    if batch < 2:
        # Ensure >= 2 row blocks so v7x's second TensorCore gets work.
        tm = min(tm, _round_up(pl.cdiv(n_rows, 2), 16))
    tm = min(tm, _round_up(n_rows, 16))             # don't overshoot tiny inputs
    return max(16, _round_up(tm, 16))


def pallas_linear_rows(h, w, b=None, n_valid=None, *, tm_target=1024):
    """out[b, i, :] = h[b, i, :] @ w (+ b) for i < n_valid.  h: (B, N, H), w: (H, O)."""
    B, N, H = h.shape
    K, n_out = w.shape
    assert H == K, (H, K)
    if n_valid is None:
        n_valid = N

    n_pad = _round_up(n_out, 128)
    k_pad = _round_up(K, 128)

    # Zero-pad the reduction dim only when needed (hidden_dim is usually 128-aligned);
    # garbage K columns would corrupt every row's sum, so this pad must stay exact.
    h_p = h if k_pad == K else jnp.pad(h, ((0, 0), (0, 0), (0, k_pad - K)))
    w_p = jnp.pad(w, ((0, k_pad - K), (0, n_pad - n_out)))

    itemsize = jnp.dtype(h.dtype).itemsize
    tm = _pick_tm(n_valid, B, k_pad, n_pad, itemsize, tm_target)
    grid = (B, pl.cdiv(n_valid, tm))

    in_specs = [
        pl.BlockSpec((1, tm, k_pad), lambda bi, i: (bi, i, 0)),   # stream activation rows
        pl.BlockSpec((k_pad, n_pad), lambda bi, i: (0, 0)),        # weight resident in VMEM
    ]
    args = [h_p, w_p]
    if b is not None:
        b_p = jnp.pad(b.astype(jnp.float32), (0, n_pad - n_out)).reshape(1, n_pad)
        in_specs.append(pl.BlockSpec((1, n_pad), lambda bi, i: (0, 0)))
        args.append(b_p)
        kernel = _linear_bias_kernel
    else:
        kernel = _linear_kernel

    rows = B * n_valid
    cost = pl.CostEstimate(
        flops=2 * rows * k_pad * n_pad,
        transcendentals=0,
        bytes_accessed=(rows * k_pad + k_pad * n_pad + rows * n_pad) * itemsize,
    )

    out = pl.pallas_call(
        kernel,
        out_shape=jax.ShapeDtypeStruct((B, n_valid, n_pad), h.dtype),
        grid_spec=pltpu.PrefetchScalarGridSpec(
            num_scalar_prefetch=0,
            grid=grid,
            in_specs=in_specs,
            out_specs=pl.BlockSpec((1, tm, n_pad), lambda bi, i: (bi, i, 0)),
        ),
        compiler_params=pltpu.CompilerParams(
            dimension_semantics=("parallel", "parallel")),
        cost_estimate=cost,
    )(*args)

    # Lane-dense kernel output (n_pad >= 128, unmasked vst); slice to the true width.
    return out[..., :n_out]


# ------------------------------ Module mirrors ----------------------------- #

class BaseDecoder:
    """JAX mirror of the abstract PyTorch BaseDecoder (no parameters)."""

    def __init__(self):
        pass

    def forward(self, *args, **kwargs):
        raise NotImplementedError('Forward method not implemented')

    def __call__(self, *args, **kwargs):
        return self.forward(*args, **kwargs)


class LinearDecoder(BaseDecoder):
    """JAX/Pallas mirror of the PyTorch LinearDecoder."""

    def __init__(self, hidden_dim, node_out_dim, n_heads, aux_node, bias=False,
                 *, key, dtype=jnp.bfloat16):
        super().__init__()
        self.node_out_dim = node_out_dim
        self.aux_node = aux_node
        # TODO(synk): n_heads is stored for API parity only — unused in the reference forward.
        self.n_heads = n_heads
        self.has_bias = bias

        # nn.Linear default init: U(-1/sqrt(fan_in), 1/sqrt(fan_in)).
        k_w, k_b = jax.random.split(key)
        bound = hidden_dim ** -0.5
        # Stored as (hidden_dim, node_out_dim) so the kernel computes h @ W directly
        # (equivalent to PyTorch's h @ weight.T).
        self.W = jax.random.uniform(k_w, (hidden_dim, node_out_dim),
                                    jnp.float32, -bound, bound).astype(dtype)
        self.b = (jax.random.uniform(k_b, (node_out_dim,), jnp.float32, -bound, bound)
                  if bias else None)

    def forward(self, h):
        """h: (batch, n_nodes_or_edges, hidden_dim) -> (logits, h_g)."""
        if self.aux_node:
            # Same semantics as the PyTorch tuple assignment: h_g views the ORIGINAL h,
            # and the projection only covers the first N - node_out_dim rows.  The row
            # restriction is done inside the kernel grid (no HBM slice copy).
            h_g = h[:, -1:, :]
            n_valid = h.shape[1] - self.node_out_dim
        else:
            h_g = None
            n_valid = h.shape[1]

        out = pallas_linear_rows(h, self.W, self.b, n_valid)
        return out, h_g


# --------------------------------- Test ------------------------------------ #

def _ref_forward(h, W, b, node_out_dim, aux_node):
    """Pure-jnp reference of the PyTorch forward (f32 accumulate, cast like the kernel)."""
    if aux_node:
        h_in, h_g = h[:, :-node_out_dim, :], h[:, -1:, :]
    else:
        h_in, h_g = h, None
    out = jnp.einsum('bnh,ho->bno', h_in.astype(jnp.float32), W.astype(jnp.float32))
    if b is not None:
        out = out + b.astype(jnp.float32)
    return out.astype(h.dtype), h_g


if __name__ == "__main__":
    key = jax.random.PRNGKey(0)
    k_h, k_h2, k_dec1, k_dec2, k_dec3 = jax.random.split(key, 5)

    batch, n_nodes, hidden_dim, node_out_dim, n_heads = 2, 21, 128, 4, 8
    h = jax.random.normal(k_h, (batch, n_nodes, hidden_dim),
                          dtype=jnp.float32).astype(jnp.bfloat16)

    # Case 1: aux_node=True, bias=False (module defaults).
    dec = LinearDecoder(hidden_dim, node_out_dim, n_heads,
                        aux_node=True, bias=False, key=k_dec1)
    out, h_g = dec(h)
    jax.block_until_ready(out)

    ref_out, ref_hg = _ref_forward(h, dec.W, dec.b, node_out_dim, True)
    assert out.shape == (batch, n_nodes - node_out_dim, node_out_dim)
    assert out.dtype == h.dtype
    assert h_g.shape == (batch, 1, hidden_dim)
    assert bool(jnp.allclose(out.astype(jnp.float32), ref_out.astype(jnp.float32),
                             rtol=2e-2, atol=1e-1))
    assert bool(jnp.array_equal(h_g, ref_hg))

    # Case 2: aux_node=False, bias=True (exercises the bias epilogue kernel).
    dec2 = LinearDecoder(hidden_dim, node_out_dim, n_heads,
                         aux_node=False, bias=True, key=k_dec2)
    out2, h_g2 = dec2(h)
    jax.block_until_ready(out2)

    ref_out2, ref_hg2 = _ref_forward(h, dec2.W, dec2.b, node_out_dim, False)
    assert out2.shape == (batch, n_nodes, node_out_dim)
    assert h_g2 is None and ref_hg2 is None
    assert bool(jnp.allclose(out2.astype(jnp.float32), ref_out2.astype(jnp.float32),
                             rtol=2e-2, atol=1e-1))

    # Case 3: hidden_dim not a multiple of 128 (exercises the conditional K zero-pad),
    # batch=1 (exercises the v7x two-block row-tile cap).
    hid3 = 96
    h3 = jax.random.normal(k_h2, (1, 37, hid3), dtype=jnp.float32).astype(jnp.bfloat16)
    dec3 = LinearDecoder(hid3, node_out_dim, n_heads,
                         aux_node=True, bias=True, key=k_dec3)
    out3, h_g3 = dec3(h3)
    jax.block_until_ready(out3)
    ref_out3, ref_hg3 = _ref_forward(h3, dec3.W, dec3.b, node_out_dim, True)
    assert out3.shape == (1, 37 - node_out_dim, node_out_dim)
    assert bool(jnp.allclose(out3.astype(jnp.float32), ref_out3.astype(jnp.float32),
                             rtol=2e-2, atol=1e-1))
    assert bool(jnp.array_equal(h_g3, ref_hg3))

    # BaseDecoder abstract semantics preserved.
    base = BaseDecoder()
    try:
        base.forward(h)
        raise RuntimeError("BaseDecoder.forward should have raised")
    except NotImplementedError:
        pass

    print("KERNEL_OK")
</pallas_src>

<mosaic_0001>
module attributes {stable_mosaic.version = 11 : i64} {
  func.func @_linear_kernel(%arg0: i32, %arg1: i32, %arg2: memref<1x32x128xbf16, #tpu.memory_space<vmem>>, %arg3: memref<128x128xbf16, #tpu.memory_space<vmem>>, %arg4: memref<1x32x128xbf16, #tpu.memory_space<vmem>>) attributes {dimension_semantics = [#tpu.dimension_semantics<parallel>, #tpu.dimension_semantics<parallel>], iteration_bounds = array<i64: 2, 1>, scalar_prefetch = 0 : i64, scratch_operands = 0 : i64, tpu.core_type = #tpu.core_type<tc>, window_params = [{transform_indices = @transform_0, window_bounds = array<i64: 1, 32, 128>}, {pipeline_mode = #tpu.pipeline_mode<synchronous>, transform_indices = @transform_1, window_bounds = array<i64: 128, 128>}, {transform_indices = @transform_2, window_bounds = array<i64: 1, 32, 128>}]} {
    %c0 = arith.constant 0 : index
    %c0_0 = arith.constant 0 : index
    %c0_1 = arith.constant 0 : index
    %0 = vector.load %arg2[%c0, %c0_0, %c0_1] : memref<1x32x128xbf16, #tpu.memory_space<vmem>>, vector<1x32x128xbf16>
    %1 = vector.shape_cast %0 : vector<1x32x128xbf16> to vector<32x128xbf16>
    %c0_2 = arith.constant 0 : index
    %c0_3 = arith.constant 0 : index
    %2 = vector.load %arg3[%c0_2, %c0_3] : memref<128x128xbf16, #tpu.memory_space<vmem>>, vector<128x128xbf16>
    %cst = arith.constant dense<0.000000e+00> : vector<32x128xf32>
    %3 = tpu.matmul %1, %2, %cst {dimension_numbers = #tpu.dot_dimension_numbers<[1], [0], [0], [1], [0, 0, 1, 1], [], []>} : vector<32x128xbf16>, vector<128x128xbf16>, vector<32x128xf32> -> vector<32x128xf32>
    %4 = arith.truncf %3 : vector<32x128xf32> to vector<32x128xbf16>
    %c0_4 = arith.constant 0 : index
    %c0_5 = arith.constant 0 : index
    %c0_6 = arith.constant 0 : index
    %5 = vector.load %arg4[%c0_4, %c0_5, %c0_6] : memref<1x32x128xbf16, #tpu.memory_space<vmem>>, vector<1x32x128xbf16>
    %6 = vector.shape_cast %5 : vector<1x32x128xbf16> to vector<32x128xbf16>
    %7 = vector.shape_cast %4 : vector<32x128xbf16> to vector<1x32x128xbf16>
    tpu.vector_store %arg4[%c0_4, %c0_5, %c0_6], %7 {strides = array<i32>} : memref<1x32x128xbf16, #tpu.memory_space<vmem>>, vector<1x32x128xbf16>,
    return
  }
  func.func @transform_0(%arg0: i32, %arg1: i32) -> (i32, i32, i32) {
    %c0_i32 = arith.constant 0 : i32
    %c0_i32_0 = arith.constant 0 : i32
    return %arg0, %arg1, %c0_i32 : i32, i32, i32
  }
  func.func @transform_1(%arg0: i32, %arg1: i32) -> (i32, i32) {
    %c0_i32 = arith.constant 0 : i32
    %c0_i32_0 = arith.constant 0 : i32
    %c0_i32_1 = arith.constant 0 : i32
    return %c0_i32, %c0_i32_0 : i32, i32
  }
  func.func @transform_2(%arg0: i32, %arg1: i32) -> (i32, i32, i32) {
    %c0_i32 = arith.constant 0 : i32
    %c0_i32_0 = arith.constant 0 : i32
    return %arg0, %arg1, %c0_i32 : i32, i32, i32
  }
}

</mosaic_0001>

<bundles_post_ra>
// kernel: tpu_custom_call.1
= control target key start
LH: loop header
LB: loop body
LE: loop exit
PB: predicated region body
PF: predicated region fallthrough
CT: control target
= control target key end

     0   :  { %7 = vsyncpa [#allocation3], 0  ;;  %s884_s9 = smov 0   ;;  %s886_s10 = smov 0   ;;  %s992_s0 = inlined_call_operand.vmem [shape: bf16[2,21,128], index: 0, kind: input, shape index: {}]   ;;  %s993_s1 = inlined_call_operand.hbm [shape: bf16[128,128], index: 1, kind: input, shape index: {}]   ;;  %s994_s2 = inlined_call_operand.vmem [shape: bf16[2,17,128], index: 2, kind: output, shape index: {}]  }
   0x1   :  { %s888_s11 = smov 0   ;;  %s890_s12 = smov 0  }
   0x2   :  { %s892_s13 = smov 0  }
   0x3 LB: > { %s599_s14 = sadd.s32 4294967295, %s860_s13   ;;  %s25_s15 = sadd.s32 1, %s856_s12  ;;  %s860_s13 = sphi %s892_s13, %s13_s13   ;;  %s856_s12 = sphi %s890_s12, %s1008_s12   ;;  %s852_s11 = sphi %s888_s11, %s1007_s11   ;;  %s848_s10 = sphi %s886_s10, %s1006_s10   ;;  %s844_s9 = sphi %s884_s9, %s1005_s9  }
   0x4   : > { %p27_p0 = scmp.ge.s32.totalorder %s25_s15, 2  ;;  %s83_s16 = sadd.s32 1, %s848_s10 }
   0x5   : > { %p93_p1 = scmp.ne.s32.totalorder %s848_s10, %s844_s9  ;;  %p94_p2 = scmp.eq.s32.totalorder %s599_s14, 1 }
   0x6   : > { %s1010_s15 = smov (%p27_p0, %s25_s15), 0  ;;  %p601_p4 = scmp.ge.s32.totalorder %s860_s13, 1 }
   0x7   : > { %p916_p3 = por %p94_p2, %p93_p1  ;;  %s78_s18 = ssub.s32 %s856_s12, %s1010_s15 }
   0x8   : > { %p107_p5 = scmp.lt.s32.totalorder %s860_s13, 3  ;;  %p81_p6 = scmp.eq.s32.totalorder %s78_s18, 0 }
   0x9   : > { %s998_s17 = scalar_select %p916_p3, 1, 0 }
   0xa   : > { %p924_p7 = pnand %p601_p4, %p107_p5  ;;  %p928_p8 = scmp.eq.s32.totalorder %s599_s14, 0 }
   0xb   : > { %s933_s21 = scalar_select %p81_p6, %s848_s10, %s83_s16  }
   0xc   : > { %s999_s19 = scalar_select %p924_p7, 1, 0 }
   0xd   : > { %s1000_s20 = scalar_select %p928_p8, 1, 0 }
   0xe   : > { %p683_p9 = pneg %p924_p7  ;;  %s866_s22 = smov [#allocation2]  }
   0xf   : > { %s119_s23 = sshll.u32 %s866_s22, 4  ;;  %s774_s27 = scalar_lea.hbm %s993_s1, 1024  ;;  %s120_s23 = int_to_ptr.vmem [resolvable:$true] %s119_s23 }
  0x10   : > { %p939_p10 = pnand %p928_p8, %p683_p9  ;;  %p775_p11 = scmp.ne.s32.totalorder %s993_s1, %s774_s27 }
  0x11   : > { %p781_p1 = scmp.lt.u32.totalorder %s774_s27, %s993_s1 }
  0x12   : > { %p776_p12 = pneg %p939_p10 }
  0x14   : > { %p777_p13 = pnand %p776_p12, %p775_p11 }
  0x16   : > { %p778_p0 = pneg %p777_p13 }
  0x18   : > { %p783_p2 = pnand %p781_p1, %p778_p0 }
  0x1a   : > { %786 = shalt.err (!%p783_p2)
}
  0x1b   : > { %s787_s4 = scalar_lea.vmem %s120_s23, 1024  ;;  %p795_p9 = scmp.lt.s32.totalorder %s120_s23, %s120_s23 }
  0x1c   : > { %p788_p4 = scmp.ne.s32.totalorder %s120_s23, %s787_s4  ;;  %p796_p3 = scmp.lt.s32.totalorder %s787_s4, %s787_s4 }
  0x1e   : > { %p790_p5 = pnand %p788_p4, %p776_p12  ;;  %p797_p8 = por %p796_p3, %p795_p9 }
  0x20   : > { %p791_p6 = pneg %p790_p5 }
  0x22   : > { %p798_p7 = pnand %p797_p8, %p791_p6 }
  0x24   : > { %801 = shalt.err (!%p798_p7)
}
  0x25   : > { %s867_s5 = smov 64   ;;  %s868_s6 = smov 4  }
  0x26   : > { %686 = dma.hbm_to_vmem [thread:$0]  (!%p939_p10), %s993_s1, 1024, %s120_s23, [#allocation3], %s867_s5, %s867_s5, %s868_s6  }
  0x27   : > { %p1002_p11 = scmp.ne.s32.totalorder %s999_s19, 0 }
  0x28   : > { %p1003_p13 = scmp.ne.s32.totalorder (!%p1002_p11), %s1000_s20, 0 }
  0x29   : > { %152 = sbr.rel (%p1002_p11) target bundleno = 310 (0x136), region = 28 }
  0x30   : > { %839 = dma.done.wait (%p1003_p13), [#allocation3], 1024  }
  0x31   : > { %841 = vsyncadd (%p1003_p13), [#allocation3], 4294966272  ;;  %p182_p3 = scmp.lt.s32.totalorder %s852_s11, 1  ;;  %v764_v0 = vld [vmem:[#allocation2] sm:$0xff]   ;;  %v765_v1 = vld [vmem:[#allocation2 + $0x8] sm:$0xff]   ;;  %s176_s20 = sand.u32 1, %s844_s9  }
  0x32   : > { %657 = vmatprep.subr.bf16.mxu0 %v764_v0  ;;  %v766_v2 = vld [vmem:[#allocation2 + $0x10] sm:$0xff]   ;;  %v767_v3 = vld [vmem:[#allocation2 + $0x18] sm:$0xff]   ;;  %v768_v5 = vld [vmem:[#allocation2 + $0x20] sm:$0xff]   ;;  %s606_s23 = sshll.u32 %s176_s20, 4  ;;  %p1004_p7 = scmp.ne.s32.totalorder %s998_s17, 0 }
  0x33   : > { %s183_s14 = scalar_select %p182_p3, %s852_s11, 1  ;;  %658 = vmatpush3.bf16.msra.mxu0 %v764_v0  ;;  %v769_v6 = vld [vmem:[#allocation2 + $0x28] sm:$0xff]   ;;  %v770_v7 = vld [vmem:[#allocation2 + $0x30] sm:$0xff]   ;;  %v771_v8 = vld [vmem:[#allocation2 + $0x38] sm:$0xff]  }
  0x34   : > { %659 = vmatprep.subr.bf16.mxu0 %v765_v1  ;;  %s178_s24 = scalar_lea.vmem [#allocation4], %s606_s23   ;;  %s678_s25 = smul.u32 (%p1004_p7), 12, %s852_s11 }
  0x35   : > { %s677_s16 = smul.u32 12, %s183_s14  ;;  %s862_s9 = smov (%p1004_p7), 0  }
  0x36   : > { %s360_s28 = scalar_lea.vmem (%p1004_p7), %s994_s2, %s678_s25  }
  0x37   : > { %s189_s22 = scalar_lea.vmem %s992_s0, %s677_s16  ;;  %660 = vmatpush3.bf16.msra.mxu0 %v765_v1 }
  0x38   : > { %661 = vmatprep.subr.bf16.mxu0 %v766_v2  ;;  %v772_v4 = vld [vmem:[%s189_s22] sm:$0xff]   ;;  %v773_v9 = vld [vmem:[%s189_s22 + $0x8] sm:$0xff]  }
  0x39   : > { %673 = vmatprep.mubr.bf16.mxu0 %v772_v4 }
  0x3b   : > { %662 = vmatpush3.bf16.msra.mxu0 %v766_v2 }
  0x3c   : > { %663 = vmatprep.subr.bf16.mxu0 %v767_v3 }
  0x3f   : > { %664 = vmatpush3.bf16.msra.mxu0 %v767_v3 }
  0x40   : > { %665 = vmatprep.subr.bf16.mxu0 %v768_v5 }
  0x43   : > { %666 = vmatpush3.bf16.msra.mxu0 %v768_v5 }
  0x44   : > { %667 = vmatprep.subr.bf16.mxu0 %v769_v6 }
  0x47   : > { %668 = vmatpush3.bf16.msra.mxu0 %v769_v6 }
  0x48   : > { %669 = vmatprep.subr.bf16.mxu0 %v770_v7 }
  0x4b   : > { %670 = vmatpush3.bf16.msra.mxu0 %v770_v7 }
  0x4c   : > { %671 = vmatprep.subr.bf16.mxu0 %v771_v8 }
  0x4f   : > { %672 = vmatpush3.bf16.msra.mxu0 %v771_v8 }
  0x52   : > { %674 = vmatmul.mubr.bf16.vlgmr.msra.gmra.mrb[0].mxu0 %v773_v9 }
 0x125   : > { %v675_v10 = vpop.f32.mrb[0].mxu0  ;;  %352 = sbr.rel (!%p1004_p7) target bundleno = 310 (0x136), region = 36 }
 0x126   : > { %v311_v11 = vpop.f32.mrb[1].mxu0 }
 0x127   : > { %v676_v12 = vpop.f32.mrb[2].mxu0 }
 0x128   : > { %v644_v13 = vpack.c.bf16 %v676_v12, %v675_v10  ;;  %v314_v14 = vpop.f32.mrb[3].mxu0 }
 0x129   : > { %v639_v15 = vpack.c.bf16 %v314_v14, %v311_v11 }
 0x12a   : > { %646 = vst [vmem:[%s178_s24 + $0x8] sm:$0xff] %v644_v13  }
 0x12b   : > { %640 = vst [vmem:[%s178_s24] sm:$0xff] %v639_v15  }
 0x12c LB: >> { %s374_s9 = sadd.s32 1, %s864_s9   ;;  %s864_s9 = sphi %s862_s9, %s374_s9  }
 0x12d   : >> { %p373_p8 = scmp.ge.s32.totalorder %s374_s9, 1 }
 0x12f   : > { %376 = sbr.rel (!%p373_p8) target bundleno = 300 (0x12c), region = 119 }
 0x131   : >> { %v384_v18 = vld [vmem:[%s178_s24 + $0x8] sm:$0xf] }
 0x132   : >> { %v380_v16 = vld [vmem:[%s178_s24] sm:$0xf]  ;;  %v382_v17 = vld [vmem:[%s178_s24 + $0x4] sm:$0xf]  ;;  %385 = vst [vmem:[%s360_s28 + $0x8] sm:$0xf] %v384_v18 }
 0x133   : >> { %381 = vst [vmem:[%s360_s28] sm:$0xf] %v380_v16  ;;  %383 = vst [vmem:[%s360_s28 + $0x4] sm:$0xf] %v382_v17 }
 0x136 PF: > { %s13_s13 = sadd.s32 1, %s860_s13   ;;  %s1005_s9 = smov %s848_s10 }
 0x137   : > { %p10_p10 = scmp.ge.s32.totalorder %s13_s13, 4   ;;  %s1006_s10 = smov %s933_s21 }
 0x138   : > { %s1007_s11 = smov %s856_s12  ;;  %s1008_s12 = smov %s1010_s15 }
 0x139   :  { %12 = sbr.rel (!%p10_p10) target bundleno = 3 (0x3), region = 141 }
 0x140   :  { %483 = vsyncpa [#allocation3], 1 }
 0x141   :  { %485 = vsyncpa [#allocation3 + $0x1], 1 }

</bundles_post_ra>
